<compile_context>
chip_gen: v5e
topology: v5e:2x2
jax: 0.10.0
libtpu: 0.0.40
codegen_flags: <defaults>
</compile_context>

<pallas_src>
import jax
import jax.numpy as jnp
from jax import lax
from jax.experimental import pallas as pl
from jax.experimental.pallas import tpu as pltpu


def _round_up(x, m):
    return ((x + m - 1) // m) * m


def _pick_row_tile(Np, cap=512):
    """Largest multiple of 128 dividing Np, <= cap, keeping >= 2 row tiles."""
    best = 128
    for t in range(128, min(cap, Np) + 1, 128):
        if Np % t == 0 and (Np // t >= 2 or Np == 128):
            best = t
    return best


def _pick_k_tile(Np, tm, Dp, budget_bytes=16 * 1024 * 1024):
    """Largest multiple of 128 dividing Np whose double-buffered working set
    (A tile bf16, scaled-feature tile bf16, f32 output tile) fits the budget.
    Ideally tk == Np so the reduction axis collapses to a single step."""
    best = 128
    for t in range(128, Np + 1, 128):
        if Np % t:
            continue
        vmem = (2 * tm * t * 2      # A tile, bf16, double buffered
                + 2 * t * Dp * 2    # scaled features tile, bf16
                + 2 * tm * Dp * 4   # f32 output block (conservative x2)
                + 2 * tm * 4)       # d_inv_sqrt row block
        if vmem <= budget_bytes:
            best = t
    return best


# ---------------------------------------------------------------------------
# Pass 1: d_inv_sqrt = rowsum(A) ** -0.5  (0 where rowsum <= 0),
#         fs = features * d_inv_sqrt   (column normalization pre-folded)
# ---------------------------------------------------------------------------
def _rowsum_scale_kernel(a_ref, f_ref, d_ref, fs_ref):
    k = pl.program_id(1)
    part = jnp.sum(a_ref[...].astype(jnp.float32), axis=1, keepdims=True)

    @pl.when(k == 0)
    def _():
        d_ref[...] = part

    @pl.when(k > 0)
    def _():
        d_ref[...] += part

    @pl.when(k == pl.num_programs(1) - 1)
    def _():
        s = d_ref[...]
        # rsqrt on the EUP; zero-rowsum rows -> 0 (torch's isinf -> 0 path).
        d = jnp.where(s > 0.0, lax.rsqrt(s), 0.0)
        d_ref[...] = d
        fs_ref[...] = (f_ref[...] * d).astype(fs_ref.dtype)


# ---------------------------------------------------------------------------
# Pass 2: out = diag(d) @ A @ fs      (fs already carries the right diag(d))
# ---------------------------------------------------------------------------
def _gcn_spmm_kernel(a_ref, fs_ref, di_ref, o_ref):
    k = pl.program_id(1)
    contrib = jnp.dot(a_ref[...], fs_ref[...],
                      preferred_element_type=jnp.float32)

    @pl.when(k == 0)
    def _():
        o_ref[...] = contrib

    @pl.when(k > 0)
    def _():
        o_ref[...] += contrib

    @pl.when(k == pl.num_programs(1) - 1)
    def _():
        # Row (left) normalization applied once, on the resident f32 output.
        o_ref[...] = o_ref[...] * di_ref[...]


# ---------------------------------------------------------------------------
# Wrapper
# ---------------------------------------------------------------------------
def gcn_layer_forward(features, adj, index):
    """features: (N, D) f32; adj: (N, N) dense f32 adjacency; index: (N,) rows."""
    N, D = features.shape
    assert adj.shape == (N, N)

    Np = _round_up(N, 128)           # pad only to the 128-lane boundary
    Dp = _round_up(D, 128)
    tm = _pick_row_tile(Np)          # row tile (parallel axis, >= 2 tiles)
    tk = _pick_k_tile(Np, tm, Dp)    # contraction tile (full Np when it fits)
    n_row, n_k = Np // tm, Np // tk

    # Cast the dominant operand to bf16 before padding (halves the HBM stream).
    adj_p = jnp.pad(adj.astype(jnp.bfloat16), ((0, Np - N), (0, Np - N)))
    feat_p = jnp.pad(features.astype(jnp.float32), ((0, Np - N), (0, Dp - D)))

    grid = (n_row, n_k)              # (row tiles [parallel], K tiles [arbitrary])
    cparams = pltpu.CompilerParams(
        dimension_semantics=("parallel", "arbitrary"),
        vmem_limit_bytes=32 * 1024 * 1024)

    # ---- pass 1: d_inv_sqrt + column-normalized features --------------------
    d, fs = pl.pallas_call(
        _rowsum_scale_kernel,
        out_shape=(jax.ShapeDtypeStruct((Np, 1), jnp.float32),
                   jax.ShapeDtypeStruct((Np, Dp), jnp.bfloat16)),
        grid_spec=pltpu.PrefetchScalarGridSpec(
            num_scalar_prefetch=0,
            grid=grid,
            in_specs=[
                pl.BlockSpec((tm, tk), lambda i, k: (i, k)),   # A tile
                pl.BlockSpec((tm, Dp), lambda i, k: (i, 0)),   # feature rows
            ],
            out_specs=[
                pl.BlockSpec((tm, 1), lambda i, k: (i, 0)),    # d_inv_sqrt
                pl.BlockSpec((tm, Dp), lambda i, k: (i, 0)),   # f * d
            ],
        ),
        compiler_params=cparams,
        cost_estimate=pl.CostEstimate(
            flops=Np * Np + Np * Dp,
            transcendentals=Np,
            bytes_accessed=Np * Np * 2 + Np * Dp * 4 + Np * Dp * 2 + Np * 4),
    )(adj_p, feat_p)

    # ---- pass 2: out = diag(d) @ A @ fs --------------------------------------
    out_p = pl.pallas_call(
        _gcn_spmm_kernel,
        out_shape=jax.ShapeDtypeStruct((Np, Dp), jnp.float32),
        grid_spec=pltpu.PrefetchScalarGridSpec(
            num_scalar_prefetch=0,
            grid=grid,
            in_specs=[
                pl.BlockSpec((tm, tk), lambda i, k: (i, k)),   # A tile (bf16)
                pl.BlockSpec((tk, Dp), lambda i, k: (k, 0)),   # scaled feat K tile
                pl.BlockSpec((tm, 1), lambda i, k: (i, 0)),    # d for out rows
            ],
            out_specs=pl.BlockSpec((tm, Dp), lambda i, k: (i, 0)),
        ),
        compiler_params=cparams,
        cost_estimate=pl.CostEstimate(
            flops=2 * Np * Np * Dp,
            transcendentals=0,
            bytes_accessed=Np * Np * 2 + Np * Dp * 2 + Np * Dp * 4 + Np * 4),
    )(adj_p, fs, d)

    out = out_p[:N, :D]

    # new_features[index] = out; rows not touched by index keep the original
    # features (torch advanced-indexing assignment -> XLA scatter).
    # TODO(synk): if `index` selects a strict subset in production, compute
    # only those output rows (scalar-prefetch gather) instead of the full spmm.
    return features.at[index].set(out)


# ---------------------------------------------------------------------------
# Pure-JAX reference (mirrors the torch module, f32 throughout)
# ---------------------------------------------------------------------------
def reference_forward(features, adj, index):
    rowsum = jnp.sum(adj, axis=1)
    d = jnp.where(rowsum > 0, 1.0 / jnp.sqrt(rowsum), 0.0)
    adj_norm = d[:, None] * adj * d[None, :]
    out = jnp.dot(adj_norm, features, precision=lax.Precision.HIGHEST)
    return features.at[index].set(out)


if __name__ == "__main__":
    N, D = 300, 48  # small graph: 300 nodes, 48-dim features

    key = jax.random.PRNGKey(0)
    k_a, k_f, k_p = jax.random.split(key, 3)

    # Sparse-ish nonnegative adjacency (~10% dense), with an isolated node to
    # exercise the rowsum == 0 -> d_inv_sqrt = 0 path of normalize_adj.
    vals = jax.random.uniform(k_a, (N, N), dtype=jnp.float32)
    adj = jnp.where(vals > 0.9, vals, 0.0)
    adj = adj.at[7, :].set(0.0)

    features = jax.random.normal(k_f, (N, D), dtype=jnp.float32)
    index = jax.random.permutation(k_p, N)  # full-coverage index, as in HGCL

    out = gcn_layer_forward(features, adj, index)
    out = jax.block_until_ready(out)

    ref = reference_forward(features, adj, index)
    # bf16 adjacency / scaled-feature stream (f32 accumulation): loosened
    # tolerance vs the pure-f32 reference — a precision trade, not a bug.
    assert jnp.allclose(out, ref, atol=3e-2, rtol=3e-2), "mismatch vs reference"

    print("KERNEL_OK")
</pallas_src>

<mosaic_0001>
module attributes {stable_mosaic.version = 11 : i64} {
  func.func @_rowsum_scale_kernel(%arg0: i32, %arg1: i32, %arg2: memref<128x384xbf16, #tpu.memory_space<vmem>>, %arg3: memref<128x128xf32, #tpu.memory_space<vmem>>, %arg4: memref<128x1xf32, #tpu.memory_space<vmem>>, %arg5: memref<128x128xbf16, #tpu.memory_space<vmem>>) attributes {dimension_semantics = [#tpu.dimension_semantics<parallel>, #tpu.dimension_semantics<arbitrary>], iteration_bounds = array<i64: 3, 1>, scalar_prefetch = 0 : i64, scratch_operands = 0 : i64, tpu.core_type = #tpu.core_type<tc>, window_params = [{transform_indices = @transform_0, window_bounds = array<i64: 128, 384>}, {transform_indices = @transform_1, window_bounds = array<i64: 128, 128>}, {transform_indices = @transform_2, window_bounds = array<i64: 128, 1>}, {transform_indices = @transform_3, window_bounds = array<i64: 128, 128>}]} {
    %c0 = arith.constant 0 : index
    %c0_0 = arith.constant 0 : index
    %0 = vector.load %arg2[%c0, %c0_0] : memref<128x384xbf16, #tpu.memory_space<vmem>>, vector<128x384xbf16>
    %1 = arith.extf %0 : vector<128x384xbf16> to vector<128x384xf32>
    %cst = arith.constant dense<0.000000e+00> : vector<128xf32>
    %2 = vector.multi_reduction <add>, %1, %cst [1] : vector<128x384xf32> to vector<128xf32>
    %3 = vector.shape_cast %2 : vector<128xf32> to vector<128x1xf32>
    %c0_i32 = arith.constant 0 : i32
    %4 = arith.cmpi eq, %arg1, %c0_i32 : i32
    %5 = arith.extui %4 : i1 to i32
    %c0_i32_1 = arith.constant 0 : i32
    %6 = arith.cmpi ne, %5, %c0_i32_1 : i32
    scf.if %6 {
      %c0_6 = arith.constant 0 : index
      %c0_7 = arith.constant 0 : index
      %13 = vector.load %arg4[%c0_6, %c0_7] : memref<128x1xf32, #tpu.memory_space<vmem>>, vector<128x1xf32>
      tpu.vector_store %arg4[%c0_6, %c0_7], %3 {strides = array<i32>} : memref<128x1xf32, #tpu.memory_space<vmem>>, vector<128x1xf32>,
    } else {
    }
    %c0_i32_2 = arith.constant 0 : i32
    %7 = arith.cmpi sgt, %arg1, %c0_i32_2 : i32
    %8 = arith.extui %7 : i1 to i32
    %c0_i32_3 = arith.constant 0 : i32
    %9 = arith.cmpi ne, %8, %c0_i32_3 : i32
    scf.if %9 {
      %c0_6 = arith.constant 0 : index
      %c0_7 = arith.constant 0 : index
      %13 = vector.load %arg4[%c0_6, %c0_7] : memref<128x1xf32, #tpu.memory_space<vmem>>, vector<128x1xf32>
      %14 = arith.addf %13, %3 : vector<128x1xf32>
      %c0_8 = arith.constant 0 : index
      %c0_9 = arith.constant 0 : index
      %15 = vector.load %arg4[%c0_8, %c0_9] : memref<128x1xf32, #tpu.memory_space<vmem>>, vector<128x1xf32>
      tpu.vector_store %arg4[%c0_8, %c0_9], %14 {strides = array<i32>} : memref<128x1xf32, #tpu.memory_space<vmem>>, vector<128x1xf32>,
    } else {
    }
    %c0_i32_4 = arith.constant 0 : i32
    %10 = arith.cmpi eq, %arg1, %c0_i32_4 : i32
    %11 = arith.extui %10 : i1 to i32
    %c0_i32_5 = arith.constant 0 : i32
    %12 = arith.cmpi ne, %11, %c0_i32_5 : i32
    scf.if %12 {
      %c0_6 = arith.constant 0 : index
      %c0_7 = arith.constant 0 : index
      %13 = vector.load %arg4[%c0_6, %c0_7] : memref<128x1xf32, #tpu.memory_space<vmem>>, vector<128x1xf32>
      %cst_8 = arith.constant 0.000000e+00 : f32
      %14 = vector.broadcast %cst_8 : f32 to vector<128x1xf32>
      %15 = arith.cmpf ogt, %13, %14 : vector<128x1xf32>
      %16 = math.rsqrt %13 : vector<128x1xf32>
      %cst_9 = arith.constant 0.000000e+00 : f32
      %17 = vector.broadcast %cst_9 : f32 to vector<128x1xf32>
      %18 = arith.select %15, %16, %17 : vector<128x1xi1>, vector<128x1xf32>
      %c0_10 = arith.constant 0 : index
      %c0_11 = arith.constant 0 : index
      %19 = vector.load %arg4[%c0_10, %c0_11] : memref<128x1xf32, #tpu.memory_space<vmem>>, vector<128x1xf32>
      tpu.vector_store %arg4[%c0_10, %c0_11], %18 {strides = array<i32>} : memref<128x1xf32, #tpu.memory_space<vmem>>, vector<128x1xf32>,
      %c0_12 = arith.constant 0 : index
      %c0_13 = arith.constant 0 : index
      %20 = vector.load %arg3[%c0_12, %c0_13] : memref<128x128xf32, #tpu.memory_space<vmem>>, vector<128x128xf32>
      %21 = vector.broadcast %18 : vector<128x1xf32> to vector<128x128xf32>
      %22 = arith.mulf %20, %21 : vector<128x128xf32>
      %23 = arith.truncf %22 : vector<128x128xf32> to vector<128x128xbf16>
      %c0_14 = arith.constant 0 : index
      %c0_15 = arith.constant 0 : index
      %24 = vector.load %arg5[%c0_14, %c0_15] : memref<128x128xbf16, #tpu.memory_space<vmem>>, vector<128x128xbf16>
      tpu.vector_store %arg5[%c0_14, %c0_15], %23 {strides = array<i32>} : memref<128x128xbf16, #tpu.memory_space<vmem>>, vector<128x128xbf16>,
    } else {
    }
    return
  }
  func.func @transform_0(%arg0: i32, %arg1: i32) -> (i32, i32) {
    %c0_i32 = arith.constant 0 : i32
    return %arg0, %arg1 : i32, i32
  }
  func.func @transform_1(%arg0: i32, %arg1: i32) -> (i32, i32) {
    %c0_i32 = arith.constant 0 : i32
    %c0_i32_0 = arith.constant 0 : i32
    return %arg0, %c0_i32 : i32, i32
  }
  func.func @transform_2(%arg0: i32, %arg1: i32) -> (i32, i32) {
    %c0_i32 = arith.constant 0 : i32
    %c0_i32_0 = arith.constant 0 : i32
    return %arg0, %c0_i32 : i32, i32
  }
  func.func @transform_3(%arg0: i32, %arg1: i32) -> (i32, i32) {
    %c0_i32 = arith.constant 0 : i32
    %c0_i32_0 = arith.constant 0 : i32
    return %arg0, %c0_i32 : i32, i32
  }
}

</mosaic_0001>

<bundles_post_ra>
// kernel: tpu_custom_call.1
= control target key start
LH: loop header
LB: loop body
LE: loop exit
PB: predicated region body
PF: predicated region fallthrough
CT: control target
= control target key end

     0   :  { %s1931_s0 = inlined_call_operand.hbm [shape: bf16[384,384], index: 0, kind: input, shape index: {}]   ;;  %s1932_s1 = inlined_call_operand.hbm [shape: f32[384,128], index: 1, kind: input, shape index: {}]   ;;  %s1933_s2 = inlined_call_operand.vmem [shape: f32[384,1], index: 2, kind: output, shape index: {0}]   ;;  %s1934_s3 = inlined_call_operand.hbm [shape: bf16[384,128], index: 3, kind: output, shape index: {1}]  }
   0x1   :  { %1936 = sst [smem:[#allocation12_spill]] %s1931_s0 }
   0x2   :  { %9 = vsyncpa [#allocation3], 0 }
   0x3   :  { %11 = vsyncpa [#allocation3 + $0x1], 0 }
   0x4   :  { %12 = vsyncpa [#allocation6], 0 }
   0x5   :  { %14 = vsyncpa [#allocation6 + $0x1], 0 }
   0x6   :  { %15 = vsyncpa [#allocation4], 0 }
   0x7   :  { %17 = vsyncpa [#allocation4 + $0x1], 0  ;;  %s1371_s12 = smov 0   ;;  %s1373_s13 = smov 0  }
   0x8   :  { %s1375_s14 = smov 0   ;;  %s1377_s15 = smov 0  }
   0x9   :  { %s1379_s16 = smov 0   ;;  %s1381_s17 = smov 0  }
   0xa LB: > { %s1015_s18 = sadd.s32 4294967295, %s1342_s17   ;;  %s1016_s19 = sadd.s32 4294967294, %s1342_s17   ;;  %s1342_s17 = sphi %s1381_s17, %s23_s17   ;;  %s1338_s16 = sphi %s1379_s16, %s1957_s16   ;;  %s1334_s15 = sphi %s1377_s15, %s1956_s15   ;;  %s1330_s14 = sphi %s1375_s14, %s1955_s14   ;;  %s1326_s13 = sphi %s1373_s13, %s1954_s13   ;;  %s1322_s12 = sphi %s1371_s12, %s1953_s12  }
   0xb   : > { %s35_s20 = sadd.s32 1, %s1338_s16  ;;  %s44_s21 = sadd.s32 1, %s1330_s14 }
   0xc   : > { %p37_p0 = scmp.ge.s32.totalorder %s35_s20, 3  ;;  %p51_p1 = scmp.ne.s32.totalorder %s1330_s14, %s1326_s13 }
   0xd   : > { %p52_p2 = scmp.eq.s32.totalorder %s1342_s17, 0  ;;  %p57_p3 = scmp.ne.s32.totalorder %s1326_s13, %s1322_s12 }
   0xe   : > { %s1959_s20 = smov (%p37_p0, %s35_s20), 0  ;;  %p58_p5 = scmp.eq.s32.totalorder %s1015_s18, 0 }
   0xf   : > { %1937 = sst [smem:[#allocation11_spill]] %s1959_s20  ;;  %p1412_p4 = por %p52_p2, %p51_p1 }
  0x10   : > { %s39_s23 = ssub.s32 %s1338_s16, %s1959_s20  ;;  %p133_p6 = scmp.eq.s32.totalorder %s1015_s18, 2 }
  0x11   : > { %p42_p7 = scmp.eq.s32.totalorder %s39_s23, 0  ;;  %p1418_p8 = por %p58_p5, %p57_p3 }
  0x12   : > { %p1422_p9 = por %p133_p6, %p51_p1  ;;  %p139_p10 = scmp.eq.s32.totalorder %s1016_s19, 2 }
  0x13   : > { %s1427_s26 = scalar_select %p42_p7, %s1330_s14, %s44_s21  }
  0x14   : > { %p1429_p11 = por %p139_p10, %p57_p3  ;;  %p1104_p12 = scmp.lt.s32.totalorder %s1342_s17, 3 }
  0x15   : > { %s1435_s28 = sand.u32 1, %s1330_s14   ;;  %s1085_s30 = smul.u32 192, %s1338_s16 }
  0x16   : > { %s1084_s29 = smul.u32 192, %s1435_s28  ;;  %p1441_p13 = pnand %p1104_p12, %p1412_p4 }
  0x17   : > { %s1943_s0 = sld [smem:[#allocation12_spill]]  ;;  %p1025_p0 = scmp.ge.s32.totalorder %s1342_s17, 1 }
  0x18   : > { %s163_s8 = scalar_lea.vmem [#allocation2], %s1084_s29  ;;  %s160_s11 = scalar_lea.sflag [#allocation3], %s1435_s28 }
  0x19   : > { %s174_s9 = sshll.u32 %s163_s8, 4  ;;  %s1344_s18 = smov 192   ;;  %s175_s9 = int_to_ptr.vmem [resolvable:$true] %s174_s9 }
  0x1a   : > { %s1345_s19 = smov 12   ;;  %p204_p1 = scmp.lt.s32.totalorder %s1342_s17, 4 }
  0x1b   : > { %s1022_s21 = sshll.u32 %s1435_s28, 7  ;;  %s1035_s22 = sshll.u32 %s1338_s16, 7 }
  0x1c   : > { %p205_p2 = pnand %p1025_p0, %p204_p1  ;;  %s193_s29 = scalar_lea.hbm %s1932_s1, %s1035_s22 }
  0x1d   : > { %s171_s7 = scalar_lea.hbm %s1943_s0, %s1085_s30  ;;  %s188_s30 = scalar_lea.vmem [#allocation5], %s1022_s21 }
  0x1e   : > { %s172_s10 = sshll.u32 %s171_s7, 4  ;;  %s196_s6 = sshll.u32 %s188_s30, 4  ;;  %s173_s10 = int_to_ptr.hbm [resolvable:$true] %s172_s10  ;;  %s197_s6 = int_to_ptr.vmem [resolvable:$true] %s196_s6 }
  0x1f   : > { %1096 = dma.hbm_to_vmem [thread:$0]  (!%p1441_p13), %s173_s10, 3072, %s175_s9, %s160_s11, %s1344_s18, %s1344_s18, %s1345_s19  }
  0x20   : > { %s194_s7 = sshll.u32 %s193_s29, 4  ;;  %s185_s8 = scalar_lea.sflag [#allocation6], %s1435_s28  ;;  %s195_s7 = int_to_ptr.hbm [resolvable:$true] %s194_s7 }
  0x21   : > { %s1346_s0 = smov 128   ;;  %s1347_s20 = smov 8  }
  0x22   : > { %1099 = dma.hbm_to_vmem [thread:$0]  (!%p1441_p13), %s195_s7, 2048, %s197_s6, %s185_s8, %s1346_s0, %s1346_s0, %s1347_s20  }
  0x23   : > { %208 = sbr.rel (%p205_p2) target bundleno = 360 (0x168), region = 28  ;;  %s1462_s9 = sand.u32 (!%p205_p2), 1, %s1326_s13  }
  0x24   : > { %s1086_s10 = smul.u32 (!%p205_p2), 192, %s1462_s9  ;;  %s211_s11 = scalar_lea.sflag (!%p205_p2), [#allocation3], %s1462_s9 }
  0x26   : > { %s1466_s18 = scalar_lea.vmem (!%p205_p2), [#allocation2], %s1086_s10 }
  0x28   : > { %1309 = dma.done.wait (%p1418_p8), %s211_s11, 3072  }
  0x29   : > { %1311 = vsyncadd (%p1418_p8), %s211_s11, 4294964224  ;;  %s1026_s0 = sshll.u32 %s1462_s9, 7  ;;  %s221_s20 = scalar_lea.sflag [#allocation6], %s1462_s9 }
  0x2a   : > { %s1474_s28 = scalar_lea.vmem [#allocation5], %s1026_s0 }
  0x2b   : > { %1313 = dma.done.wait (%p1418_p8), %s221_s20, 2048  }
  0x2c   : > { %1315 = vsyncadd (%p1418_p8), %s221_s20, 4294965248  ;;  %v276_v0 = vld [vmem:[%s1466_s18 + $0x30] sm:$0xff]  ;;  %v277_v1 = vld [vmem:[%s1466_s18 + $0x38] sm:$0xf]  ;;  %s1028_s24 = sshll.u32 %s1334_s15, 4  ;;  %vm416_vm0 = vcmask 7168  }
  0x2d   : > { %v272_v2 = vld [vmem:[%s1466_s18 + $0x18] sm:$0xff]  ;;  %v312_v3 = vunpack.c.l.bf16 %v276_v0  ;;  %v313_v4 = vunpack.c.h.bf16 %v276_v0  ;;  %v314_v5 = vunpack.c.l.bf16 %v277_v1  ;;  %v273_v6 = vld [vmem:[%s1466_s18 + $0x20] sm:$0xf]  ;;  %v269_v9 = vld [vmem:[%s1466_s18 + $0x8] sm:$0xf]  ;;  %p262_p3 = scmp.lt.s32.totalorder %s1028_s24, 47 }
  0x2e   : > { %v306_v7 = vunpack.c.l.bf16 %v272_v2  ;;  %v268_v8 = vld [vmem:[%s1466_s18] sm:$0xff]  ;;  %v307_v10 = vunpack.c.h.bf16 %v272_v2  ;;  %v308_v11 = vunpack.c.l.bf16 %v273_v6  ;;  %v270_v16 = vld [vmem:[%s1466_s18 + $0xc] sm:$0xff]  ;;  %v302_v18 = vunpack.c.l.bf16 %v269_v9  ;;  %v271_v24 = vld [vmem:[%s1466_s18 + $0x14] sm:$0xf]  ;;  %s1027_s23 = sshll.u32 %s1462_s9, 6  ;;  %s1036_s29 = sshll.u32 %s1334_s15, 6 }
  0x2f   : > { %v300_v12 = vunpack.c.l.bf16 %v268_v8  ;;  %v301_v13 = vunpack.c.h.bf16 %v268_v8  ;;  %v278_v14 = vld [vmem:[%s1466_s18 + $0x3c] sm:$0xff]  ;;  %v279_v15 = vld [vmem:[%s1466_s18 + $0x44] sm:$0xf]  ;;  %v364_v17 = vadd.f32 %v313_v4, %v312_v3  ;;  %v303_v25 = vunpack.c.l.bf16 %v270_v16  ;;  %v275_v30 = vld [vmem:[%s1466_s18 + $0x2c] sm:$0xf]  ;;  %s1961_s24 = smov (!%p262_p3, %s1028_s24), 47  ;;  %s879_s7 = scalar_lea.hbm %s1934_s3, %s1036_s29 }
  0x30   : > { %v315_v19 = vunpack.c.l.bf16 %v278_v14  ;;  %v316_v20 = vunpack.c.h.bf16 %v278_v14  ;;  %v274_v21 = vld [vmem:[%s1466_s18 + $0x24] sm:$0xff]  ;;  %v356_v22 = vadd.f32 %v307_v10, %v306_v7  ;;  %v317_v27 = vunpack.c.l.bf16 %v279_v15  ;;  %v282_v41 = vld [vmem:[%s1466_s18 + $0x54] sm:$0xff]  ;;  %v281_v52 = vld [vmem:[%s1466_s18 + $0x50] sm:$0xf]  ;;  %s1029_s4 = sshll.u32 %s1961_s24, 3  ;;  %s1871_s5 = scalar_lea.vmem [#allocation7], %s1027_s23 }
  0x31   : > { %v348_v23 = vadd.f32 %v301_v13, %v300_v12  ;;  %v365_v26 = vadd.f32 %v364_v17, %v314_v5  ;;  %v304_v29 = vunpack.c.h.bf16 %v270_v16  ;;  %v309_v33 = vunpack.c.l.bf16 %v274_v21  ;;  %v284_v39 = vld [vmem:[%s1466_s18 + $0x60] sm:$0xff]  ;;  %v280_v40 = vld [vmem:[%s1466_s18 + $0x48] sm:$0xff]  ;;  %v283_v53 = vld [vmem:[%s1466_s18 + $0x5c] sm:$0xf]  ;;  %s1516_s22 = scalar_lea.vmem %s1933_s2, %s1029_s4  ;;  %s880_s8 = sshll.u32 %s1871_s5, 4  ;;  %s881_s8 = int_to_ptr.vmem [resolvable:$true] %s880_s8 }
  0x32   : > { %v368_v28 = vadd.f32 %v316_v20, %v315_v19  ;;  %v357_v31 = vadd.f32 %v356_v22, %v308_v11  ;;  %v310_v34 = vunpack.c.h.bf16 %v274_v21  ;;  %v305_v35 = vunpack.c.l.bf16 %v271_v24  ;;  %v285_v48 = vld [vmem:[%s1466_s18 + $0x68] sm:$0xf]  ;;  %v286_v59 = vld [vmem:[%s1466_s18 + $0x6c] sm:$0xff]  ;;  %v288_v62 = vld [vmem:[%s1466_s18 + $0x78] sm:$0xff]  ;;  %s882_s10 = sshll.u32 %s879_s7, 4  ;;  %s864_s15 = scalar_lea.sflag [#allocation4], %s1462_s9  ;;  %s883_s10 = int_to_ptr.hbm [resolvable:$true] %s882_s10 }
  0x33   : > { %v349_v32 = vadd.f32 %v348_v23, %v302_v18  ;;  %366 = vadd.xlane.f32.xlu2 %v365_v26  ;;  %v352_v36 = vadd.f32 %v304_v29, %v303_v25  ;;  %v311_v37 = vunpack.c.l.bf16 %v275_v30  ;;  %v324_v44 = vunpack.c.l.bf16 %v284_v39  ;;  %v290_v56 = vld [vmem:[%s1466_s18 + $0x84] sm:$0xff]  ;;  %v291_v5 = vld [vmem:[%s1466_s18 + $0x8c] sm:$0xf]  ;;  %v287_v6 = vld [vmem:[%s1466_s18 + $0x74] sm:$0xf]  ;;  %s1270_s11 = sshra.s32 %s883_s10, 4  ;;  %s1271_s11 = int_to_ptr.hbm [resolvable:$true] %s1270_s11 }
  0x34   : > { %358 = vadd.xlane.f32.xlu1 %v357_v31  ;;  %v360_v38 = vadd.f32 %v310_v34, %v309_v33  ;;  %v369_v42 = vadd.f32 %v368_v28, %v317_v27  ;;  %v325_v45 = vunpack.c.h.bf16 %v284_v39  ;;  %v318_v46 = vunpack.c.l.bf16 %v280_v40  ;;  %v289_v10 = vld [vmem:[%s1466_s18 + $0x80] sm:$0xf]  ;;  %v296_v15 = vld [vmem:[%s1466_s18 + $0xa8] sm:$0xff]  ;;  %v292_v16 = vld [vmem:[%s1466_s18 + $0x90] sm:$0xff]  ;;  %p1277_p7 = scmp.lt.s32.totalorder %s1271_s11, %s1934_s3 }
  0x35   : > { %350 = vadd.xlane.f32.xlu0 %v349_v32  ;;  %v353_v43 = vadd.f32 %v352_v36, %v305_v35  ;;  %v319_v49 = vunpack.c.h.bf16 %v280_v40  ;;  %v321_v50 = vunpack.c.l.bf16 %v282_v41  ;;  %v322_v51 = vunpack.c.h.bf16 %v282_v41  ;;  %v294_v19 = vld [vmem:[%s1466_s18 + $0x9c] sm:$0xff]  ;;  %v297_v25 = vld [vmem:[%s1466_s18 + $0xb0] sm:$0xf]  ;;  %v293_v30 = vld [vmem:[%s1466_s18 + $0x98] sm:$0xf] }
  0x36   : > { %v361_v47 = vadd.f32 %v360_v38, %v311_v37  ;;  %v326_v54 = vunpack.c.l.bf16 %v285_v48  ;;  %v380_v55 = vadd.f32 %v325_v45, %v324_v44  ;;  %v320_v57 = vunpack.c.l.bf16 %v281_v52  ;;  %v295_v31 = vld [vmem:[%s1466_s18 + $0xa4] sm:$0xf]  ;;  %v298_v38 = vld [vmem:[%s1466_s18 + $0xb4] sm:$0xff]  ;;  %v299_v44 = vld [vmem:[%s1466_s18 + $0xbc] sm:$0xf]  ;;  %s1272_s18 = scalar_lea.hbm %s1271_s11, 64 }
  0x37   : > { %v372_v58 = vadd.f32 %v319_v49, %v318_v46  ;;  %v323_v60 = vunpack.c.l.bf16 %v283_v53  ;;  %v376_v61 = vadd.f32 %v322_v51, %v321_v50  ;;  %v333_v63 = vunpack.c.l.bf16 %v290_v56  ;;  %p1273_p4 = scmp.ne.s32.totalorder %s1271_s11, %s1272_s18 }
  0x38   : > { %v381_v0 = vadd.f32 %v380_v55, %v326_v54  ;;  %v334_v1 = vunpack.c.h.bf16 %v290_v56  ;;  %v327_v2 = vunpack.c.l.bf16 %v286_v59  ;;  %v328_v3 = vunpack.c.h.bf16 %v286_v59 }
  0x39   : > { %v373_v4 = vadd.f32 %v372_v58, %v320_v57  ;;  %v377_v7 = vadd.f32 %v376_v61, %v323_v60  ;;  %v330_v8 = vunpack.c.l.bf16 %v288_v62  ;;  %v331_v9 = vunpack.c.h.bf16 %v288_v62  ;;  %p1274_p5 = pnand %p1273_p4, %p1422_p9 }
  0x3a   : > { %v335_v11 = vunpack.c.l.bf16 %v291_v5  ;;  %v392_v12 = vadd.f32 %v334_v1, %v333_v63  ;;  %v329_v13 = vunpack.c.l.bf16 %v287_v6  ;;  %v384_v14 = vadd.f32 %v328_v3, %v327_v2 }
  0x3b   : > { %370 = vadd.xlane.f32.xlu2 %v369_v42  ;;  %v332_v17 = vunpack.c.l.bf16 %v289_v10  ;;  %v388_v18 = vadd.f32 %v331_v9, %v330_v8  ;;  %v342_v20 = vunpack.c.l.bf16 %v296_v15  ;;  %v343_v23 = vunpack.c.h.bf16 %v296_v15  ;;  %p1275_p6 = pneg %p1274_p5 }
  0x3c   : > { %362 = vadd.xlane.f32.xlu1 %v361_v47  ;;  %v393_v21 = vadd.f32 %v392_v12, %v335_v11  ;;  %v385_v22 = vadd.f32 %v384_v14, %v329_v13  ;;  %v336_v24 = vunpack.c.l.bf16 %v292_v16  ;;  %v337_v26 = vunpack.c.h.bf16 %v292_v16 }
  0x3d   : > { %354 = vadd.xlane.f32.xlu0 %v353_v43  ;;  %v389_v27 = vadd.f32 %v388_v18, %v332_v17  ;;  %v339_v28 = vunpack.c.l.bf16 %v294_v19  ;;  %v340_v29 = vunpack.c.h.bf16 %v294_v19  ;;  %v344_v32 = vunpack.c.l.bf16 %v297_v25 }
  0x3e   : > { %v404_v33 = vadd.f32 %v343_v23, %v342_v20  ;;  %v338_v34 = vunpack.c.l.bf16 %v293_v30  ;;  %v396_v35 = vadd.f32 %v337_v26, %v336_v24  ;;  %v341_v36 = vunpack.c.l.bf16 %v295_v31 }
  0x3f   : > { %v400_v37 = vadd.f32 %v340_v29, %v339_v28  ;;  %v345_v41 = vunpack.c.l.bf16 %v298_v38  ;;  %v346_v42 = vunpack.c.h.bf16 %v298_v38  ;;  %v347_v45 = vunpack.c.l.bf16 %v299_v44 }
  0x40   : > { %v405_v39 = vadd.f32 %v404_v33, %v344_v32  ;;  %v397_v40 = vadd.f32 %v396_v35, %v338_v34  ;;  %v1348_v48 = vmov 0  }
  0x41   : > { %v401_v43 = vadd.f32 %v400_v37, %v341_v36  ;;  %v408_v46 = vadd.f32 %v346_v42, %v345_v41  ;;  %1163 = vset.pattern.permute.xlu0 %v1348_v48  ;;  %1161 = vset.pattern.permute.xlu1 %v1348_v48 }
  0x42   : > { %1162 = vset.pattern.permute.xlu2 %v1348_v48 }
  0x43   : > { %382 = vadd.xlane.f32.xlu2 %v381_v0  ;;  %v409_v47 = vadd.f32 %v408_v46, %v347_v45 }
  0x44   : > { %378 = vadd.xlane.f32.xlu1 %v377_v7 }
  0x45   : > { %374 = vadd.xlane.f32.xlu0 %v373_v4 }
  0x4b   : > { %394 = vadd.xlane.f32.xlu2 %v393_v21 }
  0x4c   : > { %390 = vadd.xlane.f32.xlu1 %v389_v27 }
  0x4d   : > { %386 = vadd.xlane.f32.xlu0 %v385_v22 }
  0x53   : > { %406 = vadd.xlane.f32.xlu2 %v405_v39 }
  0x54   : > { %402 = vadd.xlane.f32.xlu1 %v401_v43 }
  0x55   : > { %398 = vadd.xlane.f32.xlu0 %v397_v40 }
  0x5d   : > { %410 = vadd.xlane.f32.xlu0 %v409_v47 }
  0xa6   : > { %v367_v49 = vpop.xlane.xlu2 %366 }
  0xa7   : > { %421 = vst.msk [vmem:[%s1516_s22 + $0x20] sm:$0xff] %vm416_vm0, %v367_v49  ;;  %v359_v50 = vpop.xlane.xlu1 %358 }
  0xa8   : > { %v351_v51 = vpop.xlane.xlu0 %350  ;;  %419 = vst.msk [vmem:[%s1516_s22 + $0x10] sm:$0xff] %vm416_vm0, %v359_v50 }
  0xa9   : > { %417 = vst.msk [vmem:[%s1516_s22] sm:$0xff] %vm416_vm0, %v351_v51 }
  0xae   : > { %v371_v52 = vpop.xlane.xlu2 %370  ;;  %v1525_v53 = vld [vmem:[%s1516_s22 + $0x20] sm:$0xff] }
  0xaf   : > { %422 = vst.msk [vmem:[%s1516_s22 + $0x28] sm:$0xff] %vm416_vm0, %v371_v52  ;;  %v363_v55 = vpop.xlane.xlu1 %362  ;;  %v1530_v56 = vld [vmem:[%s1516_s22 + $0x10] sm:$0xff]  ;;  %1164 = vrsqrt.f32 %v1525_v53  ;;  %vm567_vm3 = vweird.f32 %v1525_v53  ;;  %vm509_vm7 = vcmp.gt.f32.partialorder %v1525_v53, 0.0 }
  0xb0   : > { %v355_v54 = vpop.xlane.xlu0 %354  ;;  %1166 = vrsqrt.f32 %v1530_v56  ;;  %v1537_v57 = vld [vmem:[%s1516_s22] sm:$0xff]  ;;  %420 = vst.msk [vmem:[%s1516_s22 + $0x18] sm:$0xff] %vm416_vm0, %v363_v55  ;;  %vm547_vm1 = vweird.f32 %v1530_v56  ;;  %vm507_vm8 = vcmp.gt.f32.partialorder %v1530_v56, 0.0 }
  0xb1   : > { %418 = vst.msk [vmem:[%s1516_s22 + $0x8] sm:$0xff] %vm416_vm0, %v355_v54  ;;  %1168 = vrsqrt.f32 %v1537_v57  ;;  %vm527_vm9 = vweird.f32 %v1537_v57  ;;  %vm505_vm12 = vcmp.gt.f32.partialorder %v1537_v57, 0.0 }
  0xb5   : > { %v1165_v58 = vpop.eup %1164 }
  0xb6   : > { %v1167_v59 = vpop.eup %1166  ;;  %v383_v60 = vpop.xlane.xlu2 %382  ;;  %v562_v61 = vmul.f32 %v1165_v58, %v1525_v53  ;;  %v1544_v62 = vld [vmem:[%s1516_s22 + $0x28] sm:$0xff]  ;;  %vm568_vm4 = vweird.f32 %v1165_v58 }
  0xb7   : > { %v1546_v63 = vpop.eup %1168  ;;  %425 = vst.msk [vmem:[%s1516_s22 + $0x40] sm:$0xff] %vm416_vm0, %v383_v60  ;;  %v542_v1 = vmul.f32 %v1167_v59, %v1530_v56  ;;  %v379_v2 = vpop.xlane.xlu1 %378  ;;  %1170 = vrsqrt.f32 %v1544_v62  ;;  %v1560_v6 = vld [vmem:[%s1516_s22 + $0x18] sm:$0xff]  ;;  %vm548_vm2 = vweird.f32 %v1167_v59  ;;  %vm569_vm10 = vmor %vm567_vm3, %vm568_vm4  ;;  %vm510_vm13 = vcmp.gt.f32.partialorder %v1544_v62, 0.0 }
  0xb8   : > { %v375_v0 = vpop.xlane.xlu0 %374  ;;  %v1552_v3 = vld [vmem:[%s1516_s22 + $0x8] sm:$0xff]  ;;  %v522_v4 = vmul.f32 %v1546_v63, %v1537_v57  ;;  %v563_v5 = vmul.f32 %v1165_v58, %v562_v61  ;;  %424 = vst.msk [vmem:[%s1516_s22 + $0x38] sm:$0xff] %vm416_vm0, %v379_v2  ;;  %vm1571_vm5 = vmor %vm547_vm1, %vm548_vm2  ;;  %vm528_vm6 = vweird.f32 %v1546_v63  ;;  %vm557_vm15 = vweird.f32 %v1560_v6 }
  0xb9   : > { %423 = vst.msk [vmem:[%s1516_s22 + $0x30] sm:$0xff] %vm416_vm0, %v375_v0  ;;  %v543_v7 = vmul.f32 %v1167_v59, %v542_v1  ;;  %1172 = vrsqrt.f32 %v1552_v3  ;;  %vm529_vm11 = vmor %vm527_vm9, %vm528_vm6  ;;  %vm506_vm14 = vcmp.gt.f32.partialorder %v1552_v3, 0.0  ;;  %vm537_vm3 = vweird.f32 %v1552_v3 }
  0xba   : > { %v523_v8 = vmul.f32 %v1546_v63, %v522_v4  ;;  %v564_v9 = vmul.f32 0.5, %v563_v5  ;;  %1174 = vrsqrt.f32 %v1560_v6  ;;  %vm577_vm4 = vweird.f32 %v1544_v62 }
  0xbb   : > { %v544_v10 = vmul.f32 0.5, %v543_v7 }
  0xbc   : > { %v524_v11 = vmul.f32 0.5, %v523_v8  ;;  %v565_v12 = vsub.f32 1.5, %v564_v9 }
  0xbd   : > { %v1569_v13 = vpop.eup %1170  ;;  %v545_v14 = vsub.f32 1.5, %v544_v10 }
  0xbe   : > { %v395_v15 = vpop.xlane.xlu2 %394  ;;  %v525_v17 = vsub.f32 1.5, %v524_v11  ;;  %v566_v18 = vmul.f32 %v1165_v58, %v565_v12  ;;  %v1578_v19 = vld [vmem:[%s1516_s22 + $0x40] sm:$0xff]  ;;  %v572_v29 = vmul.f32 %v1569_v13, %v1544_v62  ;;  %vm578_vm6 = vweird.f32 %v1569_v13 }
  0xbf   : > { %v1580_v20 = vpop.eup %1172  ;;  %428 = vst.msk [vmem:[%s1516_s22 + $0x58] sm:$0xff] %vm416_vm0, %v395_v15  ;;  %v546_v22 = vmul.f32 %v1167_v59, %v545_v14  ;;  %v391_v23 = vpop.xlane.xlu1 %390  ;;  %1176 = vrsqrt.f32 %v1578_v19  ;;  %v1615_v33 = vld [vmem:[%s1516_s22 + $0x38] sm:$0xff]  ;;  %vm513_vm9 = vcmp.gt.f32.partialorder %v1578_v19, 0.0 }
  0xc0   : > { %v387_v21 = vpop.xlane.xlu0 %386  ;;  %v1590_v24 = vpop.eup %1174  ;;  %v526_v25 = vmul.f32 %v1546_v63, %v525_v17  ;;  %v570_v26 = vsel %vm569_vm10, %v1165_v58, %v566_v18  ;;  %v532_v27 = vmul.f32 %v1580_v20, %v1552_v3  ;;  %v1598_v28 = vld [vmem:[%s1516_s22 + $0x30] sm:$0xff]  ;;  %427 = vst.msk [vmem:[%s1516_s22 + $0x50] sm:$0xff] %vm416_vm0, %v391_v23  ;;  %v573_v40 = vmul.f32 %v1569_v13, %v572_v29 }
  0xc1   : > { %426 = vst.msk [vmem:[%s1516_s22 + $0x48] sm:$0xff] %vm416_vm0, %v387_v21  ;;  %v550_v30 = vsel %vm1571_vm5, %v1167_v59, %v546_v22  ;;  %v1608_v31 = vsel %vm509_vm7, %v570_v26, 0.0  ;;  %v552_v32 = vmul.f32 %v1590_v24, %v1560_v6  ;;  %1178 = vrsqrt.f32 %v1598_v28 }
  0xc2   : > { %v683_v34 = vsel %vm507_vm8, %v550_v30, 0.0  ;;  %v530_v35 = vsel %vm529_vm11, %v1546_v63, %v526_v25  ;;  %702 = vst.msk [vmem:[%s1516_s22 + $0x20] sm:$0xff] %vm416_vm0, %v1608_v31  ;;  %v533_v36 = vmul.f32 %v1580_v20, %v532_v27  ;;  %1180 = vrsqrt.f32 %v1615_v33  ;;  %vm579_vm11 = vmor %vm577_vm4, %vm578_vm6  ;;  %v714_v27 = vld [vmem:[%s1474_s28] sm:$0xff] }
  0xc3   : > { %700 = vst.msk [vmem:[%s1516_s22 + $0x10] sm:$0xff] %vm416_vm0, %v683_v34  ;;  %742 = vperm.xlu0 %1163, %v683_v34   ;;  %v681_v37 = vsel %vm505_vm12, %v530_v35, 0.0  ;;  %v553_v38 = vmul.f32 %v1590_v24, %v552_v32  ;;  %vm558_vm1 = vweird.f32 %v1590_v24  ;;  %vm538_vm2 = vweird.f32 %v1580_v20 }
  0xc4   : > { %732 = vperm.xlu1 %1161, %v681_v37   ;;  %698 = vst.msk [vmem:[%s1516_s22] sm:$0xff] %vm416_vm0, %v681_v37  ;;  %v534_v39 = vmul.f32 0.5, %v533_v36  ;;  %v574_v45 = vmul.f32 0.5, %v573_v40  ;;  %vm1660_vm5 = vmor %vm557_vm15, %vm558_vm1  ;;  %vm508_vm8 = vcmp.gt.f32.partialorder %v1560_v6, 0.0  ;;  %vm607_vm10 = vweird.f32 %v1578_v19 }
  0xc5   : > { %v1634_v41 = vpop.eup %1176  ;;  %v554_v42 = vmul.f32 0.5, %v553_v38  ;;  %vm539_vm7 = vmor %vm537_vm3, %vm538_vm2  ;;  %vm597_vm15 = vweird.f32 %v1615_v33  ;;  %vm587_vm3 = vweird.f32 %v1598_v28  ;;  %vm512_vm6 = vcmp.gt.f32.partialorder %v1615_v33, 0.0 }
  0xc6   : > { %v407_v43 = vpop.xlane.xlu2 %406  ;;  %v535_v44 = vsub.f32 1.5, %v534_v39  ;;  %v602_v46 = vmul.f32 %v1634_v41, %v1578_v19  ;;  %v1643_v47 = vld [vmem:[%s1516_s22 + $0x58] sm:$0xff]  ;;  %v575_v54 = vsub.f32 1.5, %v574_v45  ;;  %vm608_vm12 = vweird.f32 %v1634_v41 }
  0xc7   : > { %431 = vst.msk [vmem:[%s1516_s22 + $0x70] sm:$0xff] %vm416_vm0, %v407_v43  ;;  %v555_v49 = vsub.f32 1.5, %v554_v42  ;;  %v403_v50 = vpop.xlane.xlu1 %402  ;;  %1182 = vrsqrt.f32 %v1643_v47  ;;  %v1666_v56 = vpop.eup %1178  ;;  %v1684_v63 = vld [vmem:[%s1516_s22 + $0x50] sm:$0xff]  ;;  %vm609_vm2 = vmor %vm607_vm10, %vm608_vm12 }
  0xc8   : > { %v399_v48 = vpop.xlane.xlu0 %398  ;;  %v1650_v51 = vld [vmem:[%s1516_s22 + $0x48] sm:$0xff]  ;;  %v536_v52 = vmul.f32 %v1580_v20, %v535_v44  ;;  %v603_v55 = vmul.f32 %v1634_v41, %v602_v46  ;;  %430 = vst.msk [vmem:[%s1516_s22 + $0x68] sm:$0xff] %vm416_vm0, %v403_v50  ;;  %v1676_v58 = vpop.eup %1180  ;;  %v582_v60 = vmul.f32 %v1666_v56, %v1598_v28  ;;  %v576_v61 = vmul.f32 %v1569_v13, %v575_v54 }
  0xc9   : > { %429 = vst.msk [vmem:[%s1516_s22 + $0x60] sm:$0xff] %vm416_vm0, %v399_v48  ;;  %v556_v57 = vmul.f32 %v1590_v24, %v555_v49  ;;  %1184 = vrsqrt.f32 %v1650_v51  ;;  %v592_v4 = vmul.f32 %v1676_v58, %v1615_v33  ;;  %vm588_vm1 = vweird.f32 %v1666_v56 }
  0xca   : > { %v540_v59 = vsel %vm539_vm7, %v1580_v20, %v536_v52  ;;  %v604_v2 = vmul.f32 0.5, %v603_v55  ;;  %v583_v5 = vmul.f32 %v1666_v56, %v582_v60  ;;  %v580_v7 = vsel %vm579_vm11, %v1569_v13, %v576_v61 }
  0xcb   : > { %v682_v0 = vsel %vm506_vm14, %v540_v59, 0.0  ;;  %v560_v1 = vsel %vm1660_vm5, %v1590_v24, %v556_v57  ;;  %v1711_v9 = vsel %vm510_vm13, %v580_v7, 0.0  ;;  %v593_v6 = vmul.f32 %v1676_v58, %v592_v4  ;;  %vm589_vm5 = vmor %vm587_vm3, %vm588_vm1 }
  0xcc   : > { %752 = vperm.xlu1 %1161, %v1608_v31   ;;  %737 = vperm.xlu2 %1162, %v682_v0   ;;  %699 = vst.msk [vmem:[%s1516_s22 + $0x8] sm:$0xff] %vm416_vm0, %v682_v0  ;;  %v684_v3 = vsel %vm508_vm8, %v560_v1, 0.0  ;;  %v605_v10 = vsub.f32 1.5, %v604_v2  ;;  %1186 = vrsqrt.f32 %v1684_v63  ;;  %vm511_vm14 = vcmp.gt.f32.partialorder %v1598_v28, 0.0 }
  0xcd   : > { %v1705_v8 = vpop.eup %1182  ;;  %701 = vst.msk [vmem:[%s1516_s22 + $0x18] sm:$0xff] %vm416_vm0, %v684_v3  ;;  %v584_v11 = vmul.f32 0.5, %v583_v5  ;;  %v594_v16 = vmul.f32 0.5, %v593_v6  ;;  %vm598_vm13 = vweird.f32 %v1676_v58  ;;  %vm637_vm7 = vweird.f32 %v1643_v47 }
  0xce   : > { %703 = vst.msk [vmem:[%s1516_s22 + $0x28] sm:$0xff] %vm416_vm0, %v1711_v9  ;;  %v632_v62 = vmul.f32 %v1705_v8, %v1643_v47  ;;  %v1723_v12 = vld [vmem:[%s1516_s22 + $0x70] sm:$0xff]  ;;  %v606_v15 = vmul.f32 %v1634_v41, %v605_v10  ;;  %vm1756_vm4 = vmor %vm597_vm15, %vm598_vm13  ;;  %vm638_vm8 = vweird.f32 %v1705_v8  ;;  %vm617_vm10 = vweird.f32 %v1650_v51 }
  0xcf   : > { %v1725_v13 = vpop.eup %1184  ;;  %1188 = vrsqrt.f32 %v1723_v12  ;;  %v585_v18 = vsub.f32 1.5, %v584_v11  ;;  %v595_v23 = vsub.f32 1.5, %v594_v16  ;;  %v1761_v30 = vld [vmem:[%s1516_s22 + $0x68] sm:$0xff]  ;;  %vm516_vm11 = vcmp.gt.f32.partialorder %v1643_v47, 0.0  ;;  %vm639_vm12 = vmor %vm637_vm7, %vm638_vm8 }
  0xd0   : > { %v411_v14 = vpop.xlane.xlu0 %410  ;;  %v1730_v17 = vld [vmem:[%s1516_s22 + $0x60] sm:$0xff]  ;;  %v612_v20 = vmul.f32 %v1725_v13, %v1650_v51  ;;  %v633_v21 = vmul.f32 %v1705_v8, %v632_v62  ;;  %v610_v22 = vsel %vm609_vm2, %v1634_v41, %v606_v15  ;;  %vm514_vm1 = vcmp.gt.f32.partialorder %v1650_v51, 0.0 }
  0xd1   : > { %432 = vst.msk [vmem:[%s1516_s22 + $0x78] sm:$0xff] %vm416_vm0, %v411_v14  ;;  %1190 = vrsqrt.f32 %v1730_v17  ;;  %v586_v24 = vmul.f32 %v1666_v56, %v585_v18  ;;  %v1749_v25 = vsel %vm513_vm9, %v610_v22, 0.0  ;;  %v596_v19 = vmul.f32 %v1676_v58, %v595_v23 }
  0xd2   : > { %v613_v26 = vmul.f32 %v1725_v13, %v612_v20  ;;  %v634_v29 = vmul.f32 0.5, %v633_v21  ;;  %v1763_v31 = vpop.eup %1186  ;;  %706 = vst.msk [vmem:[%s1516_s22 + $0x40] sm:$0xff] %vm416_vm0, %v1749_v25  ;;  %vm618_vm9 = vweird.f32 %v1725_v13  ;;  %1192 = vrsqrt.f32 %v1761_v30 }
  0xd3   : > { %v590_v32 = vsel %vm589_vm5, %v1666_v56, %v586_v24  ;;  %v622_v36 = vmul.f32 %v1763_v31, %v1684_v63  ;;  %v600_v39 = vsel %vm1756_vm4, %v1676_v58, %v596_v19  ;;  %vm619_vm15 = vmor %vm617_vm10, %vm618_vm9  ;;  %vm628_vm13 = vweird.f32 %v1763_v31  ;;  %v717_v24 = vld [vmem:[%s1474_s28 + $0x18] sm:$0xff] }
  0xd4   : > { %747 = vperm.xlu2 %1162, %v684_v3   ;;  %v614_v34 = vmul.f32 0.5, %v613_v26  ;;  %v635_v35 = vsub.f32 1.5, %v634_v29  ;;  %v687_v38 = vsel %vm511_vm14, %v590_v32, 0.0  ;;  %v1790_v41 = vsel %vm512_vm6, %v600_v39, 0.0  ;;  %v715_v26 = vld [vmem:[%s1474_s28 + $0x8] sm:$0xff]  ;;  %v718_v39 = vld [vmem:[%s1474_s28 + $0x20] sm:$0xff] }
  0xd5   : > { %v1777_v37 = vpop.eup %1188  ;;  %762 = vperm.xlu1 %1161, %v687_v38   ;;  %704 = vst.msk [vmem:[%s1516_s22 + $0x30] sm:$0xff] %vm416_vm0, %v687_v38  ;;  %v623_v42 = vmul.f32 %v1763_v31, %v622_v36  ;;  %vm627_vm14 = vweird.f32 %v1684_v63  ;;  %vm515_vm2 = vcmp.gt.f32.partialorder %v1684_v63, 0.0  ;;  %vm667_vm4 = vweird.f32 %v1723_v12  ;;  %v719_v38 = vld [vmem:[%s1474_s28 + $0x28] sm:$0xff] }
  0xd6   : > { %v615_v40 = vsub.f32 1.5, %v614_v34  ;;  %v636_v28 = vmul.f32 %v1705_v8, %v635_v35  ;;  %705 = vst.msk [vmem:[%s1516_s22 + $0x38] sm:$0xff] %vm416_vm0, %v1790_v41  ;;  %v662_v33 = vmul.f32 %v1777_v37, %v1723_v12  ;;  %vm1829_vm3 = vmor %vm627_vm14, %vm628_vm13  ;;  %vm668_vm5 = vweird.f32 %v1777_v37 }
  0xd7   : > { %v1191_v43 = vpop.eup %1190  ;;  %v624_v47 = vmul.f32 0.5, %v623_v42  ;;  %vm647_vm7 = vweird.f32 %v1730_v17  ;;  %vm657_vm8 = vweird.f32 %v1761_v30  ;;  %vm669_vm9 = vmor %vm667_vm4, %vm668_vm5  ;;  %vm517_vm14 = vcmp.gt.f32.partialorder %v1730_v17, 0.0 }
  0xd8   : > { %v1806_v44 = vld [vmem:[%s1516_s22 + $0x78] sm:$0xff]  ;;  %v616_v45 = vmul.f32 %v1725_v13, %v615_v40  ;;  %v640_v46 = vsel %vm639_vm12, %v1705_v8, %v636_v28  ;;  %v642_v48 = vmul.f32 %v1191_v43, %v1730_v17  ;;  %v663_v50 = vmul.f32 %v1777_v37, %v662_v33  ;;  %v1193_v54 = vpop.eup %1192 }
  0xd9   : > { %v692_v49 = vsel %vm516_vm11, %v640_v46, 0.0  ;;  %1194 = vrsqrt.f32 %v1806_v44  ;;  %v625_v56 = vsub.f32 1.5, %v624_v47  ;;  %v652_v59 = vmul.f32 %v1193_v54, %v1761_v30  ;;  %v721_v33 = vld [vmem:[%s1474_s28 + $0x38] sm:$0xff] }
  0xda   : > { %v620_v52 = vsel %vm619_vm15, %v1725_v13, %v616_v45  ;;  %709 = vst.msk [vmem:[%s1516_s22 + $0x58] sm:$0xff] %vm416_vm0, %v692_v49  ;;  %v643_v53 = vmul.f32 %v1191_v43, %v642_v48  ;;  %v664_v57 = vmul.f32 0.5, %v663_v50  ;;  %vm648_vm6 = vweird.f32 %v1191_v43  ;;  %v723_v50 = vld [vmem:[%s1474_s28 + $0x48] sm:$0xff] }
  0xdb   : > { %v690_v55 = vsel %vm514_vm1, %v620_v52, 0.0  ;;  %v626_v60 = vmul.f32 %v1763_v31, %v625_v56  ;;  %v653_v1 = vmul.f32 %v1193_v54, %v652_v59  ;;  %vm658_vm10 = vweird.f32 %v1193_v54  ;;  %vm649_vm11 = vmor %vm647_vm7, %vm648_vm6  ;;  %v722_v52 = vld [vmem:[%s1474_s28 + $0x40] sm:$0xff] }
  0xdc   : > { %757 = vperm.xlu2 %1162, %v1711_v9   ;;  %777 = vperm.xlu0 %1163, %v690_v55   ;;  %707 = vst.msk [vmem:[%s1516_s22 + $0x48] sm:$0xff] %vm416_vm0, %v690_v55  ;;  %v644_v58 = vmul.f32 0.5, %v643_v53  ;;  %v665_v61 = vsub.f32 1.5, %v664_v57  ;;  %vm519_vm12 = vcmp.gt.f32.partialorder %v1723_v12, 0.0  ;;  %vm659_vm15 = vmor %vm657_vm8, %vm658_vm10  ;;  %vm518_vm13 = vcmp.gt.f32.partialorder %v1761_v30, 0.0  ;;  %v726_v59 = vld [vmem:[%s1474_s28 + $0x60] sm:$0xff] }
  0xdd   : > { %772 = vperm.xlu1 %1161, %v1749_v25   ;;  %v630_v2 = vsel %vm1829_vm3, %v1763_v31, %v626_v60  ;;  %v654_v8 = vmul.f32 0.5, %v653_v1  ;;  %vm520_vm4 = vcmp.gt.f32.partialorder %v1806_v44, 0.0  ;;  %v716_v25 = vld [vmem:[%s1474_s28 + $0x10] sm:$0xff] }
  0xde   : > { %v645_v0 = vsub.f32 1.5, %v644_v58  ;;  %v666_v4 = vmul.f32 %v1777_v37, %v665_v61  ;;  %v691_v7 = vsel %vm515_vm2, %v630_v2, 0.0  ;;  %vm677_vm2 = vweird.f32 %v1806_v44  ;;  %v727_v58 = vld [vmem:[%s1474_s28 + $0x68] sm:$0xff]  ;;  %v724_v60 = vld [vmem:[%s1474_s28 + $0x50] sm:$0xff]  ;;  %v725_v61 = vld [vmem:[%s1474_s28 + $0x58] sm:$0xff] }
  0xdf   : > { %v1195_v3 = vpop.eup %1194  ;;  %708 = vst.msk [vmem:[%s1516_s22 + $0x50] sm:$0xff] %vm416_vm0, %v691_v7  ;;  %v655_v62 = vsub.f32 1.5, %v654_v8 }
  0xe0   : > { %v646_v5 = vmul.f32 %v1191_v43, %v645_v0  ;;  %v670_v9 = vsel %vm669_vm9, %v1777_v37, %v666_v4  ;;  %v672_v10 = vmul.f32 %v1195_v3, %v1806_v44  ;;  %vm678_vm1 = vweird.f32 %v1195_v3  ;;  %v720_v44 = vld [vmem:[%s1474_s28 + $0x30] sm:$0xff] }
  0xe1   : > { %v695_v11 = vsel %vm519_vm12, %v670_v9, 0.0  ;;  %v656_v12 = vmul.f32 %v1193_v54, %v655_v62  ;;  %vm679_vm3 = vmor %vm677_vm2, %vm678_vm1  ;;  %v729_v9 = vld [vmem:[%s1474_s28 + $0x78] sm:$0xff] }
  0xe2   : > { %v650_v6 = vsel %vm649_vm11, %v1191_v43, %v646_v5  ;;  %712 = vst.msk [vmem:[%s1516_s22 + $0x70] sm:$0xff] %vm416_vm0, %v695_v11  ;;  %v673_v13 = vmul.f32 %v1195_v3, %v672_v10  ;;  %v728_v10 = vld [vmem:[%s1474_s28 + $0x70] sm:$0xff]  ;;  %s1276_s28 = scalar_lea.hbm %s1934_s3, 192 }
  0xe3   : > { %v693_v63 = vsel %vm517_vm14, %v650_v6, 0.0  ;;  %v660_v15 = vsel %vm659_vm15, %v1193_v54, %v656_v12  ;;  %p1278_p8 = scmp.lt.s32.totalorder %s1276_s28, %s1272_s18 }
  0xe4   : > { %767 = vperm.xlu2 %1162, %v1790_v41   ;;  %792 = vperm.xlu0 %1163, %v693_v63   ;;  %710 = vst.msk [vmem:[%s1516_s22 + $0x60] sm:$0xff] %vm416_vm0, %v693_v63  ;;  %v674_v14 = vmul.f32 0.5, %v673_v13  ;;  %v694_v17 = vsel %vm518_vm13, %v660_v15, 0.0 }
  0xe5   : > { %787 = vperm.xlu1 %1161, %v692_v49   ;;  %711 = vst.msk [vmem:[%s1516_s22 + $0x68] sm:$0xff] %vm416_vm0, %v694_v17  ;;  %p1279_p10 = por %p1278_p8, %p1277_p7 }
  0xe6   : > { %v675_v16 = vsub.f32 1.5, %v674_v14 }
  0xe7   : > { %p1280_p12 = pnand %p1279_p10, %p1275_p6 }
  0xe8   : > { %v676_v18 = vmul.f32 %v1195_v3, %v675_v16 }
  0xea   : > { %v680_v20 = vsel %vm679_vm3, %v1195_v3, %v676_v18 }
  0xeb   : > { %v696_v21 = vsel %vm520_vm4, %v680_v20, 0.0 }
  0xec   : > { %782 = vperm.xlu2 %1162, %v691_v7   ;;  %807 = vperm.xlu0 %1163, %v696_v21   ;;  %713 = vst.msk [vmem:[%s1516_s22 + $0x78] sm:$0xff] %vm416_vm0, %v696_v21 }
  0xed   : > { %802 = vperm.xlu1 %1161, %v695_v11  }
  0xf4   : > { %797 = vperm.xlu2 %1162, %v694_v17  }
 0x126   : > { %v738_v22 = vpop.permute.xlu2 %737 }
 0x127   : > { %v811_v34 = vmul.f32 %v738_v22, %v715_v26 }
 0x12e   : > { %v748_v23 = vpop.permute.xlu2 %747 }
 0x12f   : > { %v813_v30 = vmul.f32 %v748_v23, %v717_v24 }
 0x135   : > { %v743_v29 = vpop.permute.xlu0 %742 }
 0x136   : > { %v733_v31 = vpop.permute.xlu1 %732  ;;  %v758_v19 = vpop.permute.xlu2 %757  ;;  %v812_v32 = vmul.f32 %v743_v29, %v716_v25 }
 0x137   : > { %v810_v35 = vmul.f32 %v733_v31, %v714_v27  ;;  %v815_v41 = vmul.f32 %v758_v19, %v719_v38 }
 0x138   : > { %v1045_v36 = vpack.c.bf16 %v813_v30, %v812_v32 }
 0x139   : > { %v1040_v37 = vpack.c.bf16 %v811_v34, %v810_v35 }
 0x13a   : > { %1077 = vst [vmem:[%s1871_s5 + $0x8] sm:$0xff] %v1045_v36  }
 0x13b   : > { %1041 = vst [vmem:[%s1871_s5] sm:$0xff] %v1040_v37  }
 0x13e   : > { %v753_v40 = vpop.permute.xlu1 %752  ;;  %v768_v42 = vpop.permute.xlu2 %767 }
 0x13f   : > { %v814_v28 = vmul.f32 %v753_v40, %v718_v39  ;;  %v817_v46 = vmul.f32 %v768_v42, %v721_v33 }
 0x141   : > { %v1050_v43 = vpack.c.bf16 %v815_v41, %v814_v28 }
 0x143   : > { %1078 = vst [vmem:[%s1871_s5 + $0x10] sm:$0xff] %v1050_v43  }
 0x146   : > { %v783_v49 = vpop.permute.xlu2 %782 }
 0x147   : > { %v763_v45 = vpop.permute.xlu1 %762  ;;  %v820_v3 = vmul.f32 %v783_v49, %v724_v60 }
 0x148   : > { %v816_v48 = vmul.f32 %v763_v45, %v720_v44 }
 0x14a   : > { %v1055_v47 = vpack.c.bf16 %v817_v46, %v816_v48 }
 0x14c   : > { %1079 = vst [vmem:[%s1871_s5 + $0x18] sm:$0xff] %v1055_v47  }
 0x14e   : > { %v778_v53 = vpop.permute.xlu0 %777  ;;  %v798_v51 = vpop.permute.xlu2 %797 }
 0x14f   : > { %v819_v54 = vmul.f32 %v778_v53, %v723_v50  ;;  %v773_v55 = vpop.permute.xlu1 %772  ;;  %v823_v1 = vmul.f32 %v798_v51, %v727_v58 }
 0x150   : > { %v818_v56 = vmul.f32 %v773_v55, %v722_v52 }
 0x152   : > { %v1060_v57 = vpack.c.bf16 %v819_v54, %v818_v56 }
 0x154   : > { %1080 = vst [vmem:[%s1871_s5 + $0x20] sm:$0xff] %v1060_v57  }
 0x156   : > { %v793_v0 = vpop.permute.xlu0 %792 }
 0x157   : > { %v822_v2 = vmul.f32 %v793_v0, %v726_v59  ;;  %v788_v4 = vpop.permute.xlu1 %787 }
 0x158   : > { %v821_v5 = vmul.f32 %v788_v4, %v725_v61 }
 0x159   : > { %v1070_v7 = vpack.c.bf16 %v823_v1, %v822_v2 }
 0x15a   : > { %v1065_v8 = vpack.c.bf16 %v821_v5, %v820_v3 }
 0x15b   : > { %1082 = vst [vmem:[%s1871_s5 + $0x30] sm:$0xff] %v1070_v7  }
 0x15c   : > { %1081 = vst [vmem:[%s1871_s5 + $0x28] sm:$0xff] %v1065_v8  }
 0x15e   : > { %v808_v6 = vpop.permute.xlu0 %807 }
 0x15f   : > { %v803_v11 = vpop.permute.xlu1 %802  ;;  %v825_v62 = vmul.f32 %v808_v6, %v729_v9 }
 0x160   : > { %v824_v63 = vmul.f32 %v803_v11, %v728_v10 }
 0x162   : > { %v1075_v13 = vpack.c.bf16 %v825_v62, %v824_v63 }
 0x164   : > { %1083 = vst [vmem:[%s1871_s5 + $0x38] sm:$0xff] %v1075_v13  }
 0x165   : > { %1283 = shalt.err (!%p1280_p12)
}
 0x166   : > { %s1349_s9 = smov 64   ;;  %s1350_s19 = smov 4  }
 0x167   : > { %1091 = dma.vmem_to_hbm [thread:$0]  (%p1422_p9), %s881_s8, 1024, %s883_s10, %s864_s15, %s1349_s9, %s1349_s9, %s1350_s19  }
 0x168 PF: > { %p1105_p13 = scmp.ge.s32.totalorder %s1342_s17, 2  ;;  %s905_s21 = sand.u32 1, %s1322_s12  }
 0x169   : > { %s906_s22 = scalar_lea.sflag [#allocation4], %s905_s21 }
 0x16a   : > { %p1101_p0 = pnand %p1105_p13, %p1429_p11 }
 0x16c   : > { %p1102_p1 = pneg %p1101_p0 }
 0x16e   : > { %1317 = dma.done.wait (%p1102_p1), %s906_s22, 1024  }
 0x16f   : > { %1319 = vsyncadd (%p1102_p1), %s906_s22, 4294966272  ;;  %s23_s17 = sadd.s32 1, %s1342_s17   ;;  %s1952_s25 = sld [smem:[#allocation11_spill]] }
 0x170   : > { %p20_p2 = scmp.ge.s32.totalorder %s23_s17, 5   ;;  %s1953_s12 = smov %s1326_s13 }
 0x171   : > { %s1954_s13 = smov %s1330_s14  ;;  %s1955_s14 = smov %s1427_s26 }
 0x172   : > { %s1956_s15 = smov %s1338_s16  ;;  %22 = sbr.rel (!%p20_p2) target bundleno = 10 (0xa), region = 110 }
 0x175   : > { %s1957_s16 = smov %s1952_s25 }
 0x177   :  { %912 = vsyncpa [#allocation3], 1 }
 0x178   :  { %914 = vsyncpa [#allocation3 + $0x1], 1 }
 0x179   :  { %915 = vsyncpa [#allocation6], 1 }
 0x17a   :  { %917 = vsyncpa [#allocation6 + $0x1], 1 }
 0x17b   :  { %918 = vsyncpa [#allocation4], 1 }
 0x17c   :  { %920 = vsyncpa [#allocation4 + $0x1], 1 }

</bundles_post_ra>
